<compile_context>
chip_gen: v5e
topology: v5e:2x2
jax: 0.10.0
libtpu: 0.0.40
codegen_flags: <defaults>
</compile_context>

<pallas_src>
import functools

import jax
import jax.numpy as jnp
from jax.experimental import pallas as pl
from jax.experimental.pallas import tpu as pltpu

EPS = 1e-5      # PyTorch BatchNorm1d default
LANE = 128      # TPU lane width
BF16_WIDTH = 512  # padded width at which bf16 MXU inputs start paying off (v6e/v7x)


def _round_up(n, m):
    return ((n + m - 1) // m) * m


def _fused_mlp_kernel(x_ref, w_ref, b_ref, o_ref, *, n_layers, inv_batch, mxu_dtype):
    """x:(B,P) w:(L,P,P) b:(L,1,P) out:(B,P); all f32, lane-padded, VMEM-resident."""
    h = x_ref[...]                                    # activations never leave VMEM
    for i in range(n_layers):                         # static unroll over layers
        w = w_ref[i]                                  # static leading-dim index -> (P, P)
        b = b_ref[i]                                  # (1, P)
        if i < n_layers - 1:
            # Linear -> Sigmoid -> BatchNorm1d (training stats, biased variance)
            z = jnp.dot(h.astype(mxu_dtype), w.astype(mxu_dtype),
                        preferred_element_type=jnp.float32) + b
            s = 0.5 * (jnp.tanh(0.5 * z) + 1.0)       # sigmoid via one EUP tanh
            mean = jnp.sum(s, axis=0, keepdims=True) * inv_batch
            c = s - mean
            var = jnp.sum(c * c, axis=0, keepdims=True) * inv_batch   # two-pass, biased
            h = c * jax.lax.rsqrt(var + EPS)
        else:
            # BatchNorm1d -> Linear (final layer)
            mean = jnp.sum(h, axis=0, keepdims=True) * inv_batch
            c = h - mean
            var = jnp.sum(c * c, axis=0, keepdims=True) * inv_batch
            hn = c * jax.lax.rsqrt(var + EPS)
            o_ref[...] = jnp.dot(hn.astype(mxu_dtype), w.astype(mxu_dtype),
                                 preferred_element_type=jnp.float32) + b


def prepare_params(params, input_size):
    """One-time: zero-pad all layer params to a common lane-multiple width and stack.

    params: list of (w (in,out) f32, b (1,out) f32). Returns (W (L,P,P), B (L,1,P), d_out).
    """
    dims = [input_size] + [w.shape[1] for (w, _) in params]
    P = max(_round_up(d, LANE) for d in dims)
    L = len(params)
    W = jnp.zeros((L, P, P), jnp.float32)
    Bv = jnp.zeros((L, 1, P), jnp.float32)
    for i, (w, b) in enumerate(params):
        W = W.at[i, : w.shape[0], : w.shape[1]].set(w.astype(jnp.float32))
        Bv = Bv.at[i, :, : b.shape[1]].set(b.astype(jnp.float32))
    return W, Bv, dims[-1]


@functools.partial(jax.jit, static_argnames=("d_out",))
def mlp_net_forward(x, w_stacked, b_stacked, *, d_out):
    """x: (B, input_size) f32; w_stacked: (L,P,P); b_stacked: (L,1,P) from prepare_params."""
    B, d_in = x.shape
    L, P, _ = w_stacked.shape

    # Single input pad (fused under jit); params are already padded/stacked at init.
    xp = jnp.zeros((B, P), jnp.float32).at[:, :d_in].set(x)

    # bf16 MXU inputs only once layers are wide enough to matter (v6e/v7x native bf16).
    mxu_dtype = jnp.bfloat16 if P >= BF16_WIDTH else jnp.float32

    # Explicit VMEM budget: resident x + out + stacked W/b, with 2x headroom for
    # per-layer temporaries; clamped to a range safe on every generation
    # (>= v5e's 16 MiB scoped default, well under v7x's 64 MiB physical).
    resident = 4 * (2 * B * P + L * P * P + L * P)
    vmem_limit = int(min(max(2 * resident + (1 << 20), 16 << 20), 48 << 20))

    kernel = functools.partial(
        _fused_mlp_kernel, n_layers=L, inv_batch=1.0 / B, mxu_dtype=mxu_dtype)

    out_padded = pl.pallas_call(
        kernel,
        out_shape=jax.ShapeDtypeStruct((B, P), jnp.float32),
        in_specs=[
            pl.BlockSpec(memory_space=pltpu.VMEM),   # x
            pl.BlockSpec(memory_space=pltpu.VMEM),   # stacked weights
            pl.BlockSpec(memory_space=pltpu.VMEM),   # stacked biases
        ],
        out_specs=pl.BlockSpec(memory_space=pltpu.VMEM),
        compiler_params=pltpu.CompilerParams(vmem_limit_bytes=vmem_limit),
    )(xp, w_stacked, b_stacked)

    return out_padded[:, :d_out]


def init_params(key, layer_sizes, input_size):
    """Deterministic init mimicking nn.Linear's uniform(-1/sqrt(fan_in), 1/sqrt(fan_in))."""
    sizes = [input_size] + list(layer_sizes)
    params = []
    for l_id in range(len(sizes) - 1):
        fan_in, fan_out = sizes[l_id], sizes[l_id + 1]
        key, kw, kb = jax.random.split(key, 3)
        bound = 1.0 / (fan_in ** 0.5)
        w = jax.random.uniform(kw, (fan_in, fan_out), jnp.float32, -bound, bound)
        b = jax.random.uniform(kb, (1, fan_out), jnp.float32, -bound, bound)
        params.append((w, b))
    return params


if __name__ == "__main__":
    key = jax.random.PRNGKey(0)
    batch = 8
    input_size = 32
    layer_sizes = [32, 32, 16]   # 2 hidden (Linear->Sigmoid->BN) + final (BN->Linear)

    kx, kp = jax.random.split(key)
    x = jax.random.normal(kx, (batch, input_size), jnp.float32)
    params = init_params(kp, layer_sizes, input_size)

    # One-time padding / stacking (hoisted out of the forward path).
    w_stacked, b_stacked, d_out = prepare_params(params, input_size)

    out = mlp_net_forward(x, w_stacked, b_stacked, d_out=d_out)
    jax.block_until_ready(out)
    assert out.shape == (batch, layer_sizes[-1])
    assert bool(jnp.all(jnp.isfinite(out)))
    print("KERNEL_OK")
</pallas_src>

<mosaic_0001>
module attributes {stable_mosaic.version = 11 : i64} {
  func.func @_fused_mlp_kernel(%arg0: memref<8x128xf32, #tpu.memory_space<vmem>>, %arg1: memref<3x128x128xf32, #tpu.memory_space<vmem>>, %arg2: memref<3x1x128xf32, #tpu.memory_space<vmem>>, %arg3: memref<8x128xf32, #tpu.memory_space<vmem>>) attributes {dimension_semantics = [], scalar_prefetch = 0 : i64, scratch_operands = 0 : i64, tpu.core_type = #tpu.core_type<tc>} {
    %c0 = arith.constant 0 : index
    %c0_0 = arith.constant 0 : index
    %0 = vector.load %arg0[%c0, %c0_0] : memref<8x128xf32, #tpu.memory_space<vmem>>, vector<8x128xf32>
    %c0_1 = arith.constant 0 : index
    %c0_2 = arith.constant 0 : index
    %c0_3 = arith.constant 0 : index
    %1 = vector.load %arg1[%c0_1, %c0_2, %c0_3] : memref<3x128x128xf32, #tpu.memory_space<vmem>>, vector<1x128x128xf32>
    %2 = vector.shape_cast %1 : vector<1x128x128xf32> to vector<128x128xf32>
    %c0_4 = arith.constant 0 : index
    %c0_5 = arith.constant 0 : index
    %c0_6 = arith.constant 0 : index
    %3 = vector.load %arg2[%c0_4, %c0_5, %c0_6] : memref<3x1x128xf32, #tpu.memory_space<vmem>>, vector<1x1x128xf32>
    %4 = vector.shape_cast %3 : vector<1x1x128xf32> to vector<1x128xf32>
    %cst = arith.constant dense<0.000000e+00> : vector<8x128xf32>
    %5 = tpu.matmul %0, %2, %cst {dimension_numbers = #tpu.dot_dimension_numbers<[1], [0], [0], [1], [0, 0, 1, 1], [], []>} : vector<8x128xf32>, vector<128x128xf32>, vector<8x128xf32> -> vector<8x128xf32>
    %6 = vector.broadcast %4 : vector<1x128xf32> to vector<8x128xf32>
    %7 = arith.addf %5, %6 : vector<8x128xf32>
    %cst_7 = arith.constant 5.000000e-01 : f32
    %8 = vector.broadcast %cst_7 : f32 to vector<8x128xf32>
    %9 = arith.mulf %8, %7 : vector<8x128xf32>
    %10 = math.tanh %9 : vector<8x128xf32>
    %cst_8 = arith.constant 1.000000e+00 : f32
    %11 = vector.broadcast %cst_8 : f32 to vector<8x128xf32>
    %12 = arith.addf %10, %11 : vector<8x128xf32>
    %cst_9 = arith.constant 5.000000e-01 : f32
    %13 = vector.broadcast %cst_9 : f32 to vector<8x128xf32>
    %14 = arith.mulf %13, %12 : vector<8x128xf32>
    %cst_10 = arith.constant dense<0.000000e+00> : vector<128xf32>
    %15 = vector.multi_reduction <add>, %14, %cst_10 [0] : vector<8x128xf32> to vector<128xf32>
    %16 = vector.shape_cast %15 : vector<128xf32> to vector<1x128xf32>
    %cst_11 = arith.constant 1.250000e-01 : f32
    %17 = vector.broadcast %cst_11 : f32 to vector<1x128xf32>
    %18 = arith.mulf %16, %17 : vector<1x128xf32>
    %19 = vector.broadcast %18 : vector<1x128xf32> to vector<8x128xf32>
    %20 = arith.subf %14, %19 : vector<8x128xf32>
    %21 = arith.mulf %20, %20 : vector<8x128xf32>
    %cst_12 = arith.constant dense<0.000000e+00> : vector<128xf32>
    %22 = vector.multi_reduction <add>, %21, %cst_12 [0] : vector<8x128xf32> to vector<128xf32>
    %23 = vector.shape_cast %22 : vector<128xf32> to vector<1x128xf32>
    %cst_13 = arith.constant 1.250000e-01 : f32
    %24 = vector.broadcast %cst_13 : f32 to vector<1x128xf32>
    %25 = arith.mulf %23, %24 : vector<1x128xf32>
    %cst_14 = arith.constant 9.99999974E-6 : f32
    %26 = vector.broadcast %cst_14 : f32 to vector<1x128xf32>
    %27 = arith.addf %25, %26 : vector<1x128xf32>
    %28 = math.rsqrt %27 : vector<1x128xf32>
    %29 = vector.broadcast %28 : vector<1x128xf32> to vector<8x128xf32>
    %30 = arith.mulf %20, %29 : vector<8x128xf32>
    %c1 = arith.constant 1 : index
    %c0_15 = arith.constant 0 : index
    %c0_16 = arith.constant 0 : index
    %31 = vector.load %arg1[%c1, %c0_15, %c0_16] : memref<3x128x128xf32, #tpu.memory_space<vmem>>, vector<1x128x128xf32>
    %32 = vector.shape_cast %31 : vector<1x128x128xf32> to vector<128x128xf32>
    %c1_17 = arith.constant 1 : index
    %c0_18 = arith.constant 0 : index
    %c0_19 = arith.constant 0 : index
    %33 = vector.load %arg2[%c1_17, %c0_18, %c0_19] : memref<3x1x128xf32, #tpu.memory_space<vmem>>, vector<1x1x128xf32>
    %34 = vector.shape_cast %33 : vector<1x1x128xf32> to vector<1x128xf32>
    %cst_20 = arith.constant dense<0.000000e+00> : vector<8x128xf32>
    %35 = tpu.matmul %30, %32, %cst_20 {dimension_numbers = #tpu.dot_dimension_numbers<[1], [0], [0], [1], [0, 0, 1, 1], [], []>} : vector<8x128xf32>, vector<128x128xf32>, vector<8x128xf32> -> vector<8x128xf32>
    %36 = vector.broadcast %34 : vector<1x128xf32> to vector<8x128xf32>
    %37 = arith.addf %35, %36 : vector<8x128xf32>
    %cst_21 = arith.constant 5.000000e-01 : f32
    %38 = vector.broadcast %cst_21 : f32 to vector<8x128xf32>
    %39 = arith.mulf %38, %37 : vector<8x128xf32>
    %40 = math.tanh %39 : vector<8x128xf32>
    %cst_22 = arith.constant 1.000000e+00 : f32
    %41 = vector.broadcast %cst_22 : f32 to vector<8x128xf32>
    %42 = arith.addf %40, %41 : vector<8x128xf32>
    %cst_23 = arith.constant 5.000000e-01 : f32
    %43 = vector.broadcast %cst_23 : f32 to vector<8x128xf32>
    %44 = arith.mulf %43, %42 : vector<8x128xf32>
    %cst_24 = arith.constant dense<0.000000e+00> : vector<128xf32>
    %45 = vector.multi_reduction <add>, %44, %cst_24 [0] : vector<8x128xf32> to vector<128xf32>
    %46 = vector.shape_cast %45 : vector<128xf32> to vector<1x128xf32>
    %cst_25 = arith.constant 1.250000e-01 : f32
    %47 = vector.broadcast %cst_25 : f32 to vector<1x128xf32>
    %48 = arith.mulf %46, %47 : vector<1x128xf32>
    %49 = vector.broadcast %48 : vector<1x128xf32> to vector<8x128xf32>
    %50 = arith.subf %44, %49 : vector<8x128xf32>
    %51 = arith.mulf %50, %50 : vector<8x128xf32>
    %cst_26 = arith.constant dense<0.000000e+00> : vector<128xf32>
    %52 = vector.multi_reduction <add>, %51, %cst_26 [0] : vector<8x128xf32> to vector<128xf32>
    %53 = vector.shape_cast %52 : vector<128xf32> to vector<1x128xf32>
    %cst_27 = arith.constant 1.250000e-01 : f32
    %54 = vector.broadcast %cst_27 : f32 to vector<1x128xf32>
    %55 = arith.mulf %53, %54 : vector<1x128xf32>
    %cst_28 = arith.constant 9.99999974E-6 : f32
    %56 = vector.broadcast %cst_28 : f32 to vector<1x128xf32>
    %57 = arith.addf %55, %56 : vector<1x128xf32>
    %58 = math.rsqrt %57 : vector<1x128xf32>
    %59 = vector.broadcast %58 : vector<1x128xf32> to vector<8x128xf32>
    %60 = arith.mulf %50, %59 : vector<8x128xf32>
    %c2 = arith.constant 2 : index
    %c0_29 = arith.constant 0 : index
    %c0_30 = arith.constant 0 : index
    %61 = vector.load %arg1[%c2, %c0_29, %c0_30] : memref<3x128x128xf32, #tpu.memory_space<vmem>>, vector<1x128x128xf32>
    %62 = vector.shape_cast %61 : vector<1x128x128xf32> to vector<128x128xf32>
    %c2_31 = arith.constant 2 : index
    %c0_32 = arith.constant 0 : index
    %c0_33 = arith.constant 0 : index
    %63 = vector.load %arg2[%c2_31, %c0_32, %c0_33] : memref<3x1x128xf32, #tpu.memory_space<vmem>>, vector<1x1x128xf32>
    %64 = vector.shape_cast %63 : vector<1x1x128xf32> to vector<1x128xf32>
    %cst_34 = arith.constant dense<0.000000e+00> : vector<128xf32>
    %65 = vector.multi_reduction <add>, %60, %cst_34 [0] : vector<8x128xf32> to vector<128xf32>
    %66 = vector.shape_cast %65 : vector<128xf32> to vector<1x128xf32>
    %cst_35 = arith.constant 1.250000e-01 : f32
    %67 = vector.broadcast %cst_35 : f32 to vector<1x128xf32>
    %68 = arith.mulf %66, %67 : vector<1x128xf32>
    %69 = vector.broadcast %68 : vector<1x128xf32> to vector<8x128xf32>
    %70 = arith.subf %60, %69 : vector<8x128xf32>
    %71 = arith.mulf %70, %70 : vector<8x128xf32>
    %cst_36 = arith.constant dense<0.000000e+00> : vector<128xf32>
    %72 = vector.multi_reduction <add>, %71, %cst_36 [0] : vector<8x128xf32> to vector<128xf32>
    %73 = vector.shape_cast %72 : vector<128xf32> to vector<1x128xf32>
    %cst_37 = arith.constant 1.250000e-01 : f32
    %74 = vector.broadcast %cst_37 : f32 to vector<1x128xf32>
    %75 = arith.mulf %73, %74 : vector<1x128xf32>
    %cst_38 = arith.constant 9.99999974E-6 : f32
    %76 = vector.broadcast %cst_38 : f32 to vector<1x128xf32>
    %77 = arith.addf %75, %76 : vector<1x128xf32>
    %78 = math.rsqrt %77 : vector<1x128xf32>
    %79 = vector.broadcast %78 : vector<1x128xf32> to vector<8x128xf32>
    %80 = arith.mulf %70, %79 : vector<8x128xf32>
    %cst_39 = arith.constant dense<0.000000e+00> : vector<8x128xf32>
    %81 = tpu.matmul %80, %62, %cst_39 {dimension_numbers = #tpu.dot_dimension_numbers<[1], [0], [0], [1], [0, 0, 1, 1], [], []>} : vector<8x128xf32>, vector<128x128xf32>, vector<8x128xf32> -> vector<8x128xf32>
    %82 = vector.broadcast %64 : vector<1x128xf32> to vector<8x128xf32>
    %83 = arith.addf %81, %82 : vector<8x128xf32>
    %c0_40 = arith.constant 0 : index
    %c0_41 = arith.constant 0 : index
    %84 = vector.load %arg3[%c0_40, %c0_41] : memref<8x128xf32, #tpu.memory_space<vmem>>, vector<8x128xf32>
    tpu.vector_store %arg3[%c0_40, %c0_41], %83 {strides = array<i32>} : memref<8x128xf32, #tpu.memory_space<vmem>>, vector<8x128xf32>,
    return
  }
}

</mosaic_0001>

<bundles_post_ra>
// kernel: mlp_net_forward.1
= control target key start
LH: loop header
LB: loop body
LE: loop exit
PB: predicated region body
PF: predicated region fallthrough
CT: control target
= control target key end

     0   :  { %8 = vsyncpa [#allocation3], 0  ;;  %s379_s0 = inlined_call_operand.vmem [shape: f32[8,128], index: 0, kind: input, shape index: {}]   ;;  %s380_s1 = inlined_call_operand.hbm [shape: f32[3,128,128], index: 1, kind: input, shape index: {}]   ;;  %s381_s2 = inlined_call_operand.vmem [shape: f32[3,1,128], index: 2, kind: input, shape index: {}]   ;;  %s382_s3 = inlined_call_operand.hbm [shape: f32[8,128], index: 3, kind: output, shape index: {}]  }
   0x1   :  { %9 = vsyncpa [#allocation4], 0  ;;  %s16_s14 = sshll.u32 %s380_s1, 4  ;;  %s337_s15 = smov [#allocation2]   ;;  %s17_s14 = int_to_ptr.hbm [resolvable:$true] %s16_s14 }
   0x2   :  { %s18_s16 = sshll.u32 %s337_s15, 4  ;;  %s338_s17 = smov 128   ;;  %s19_s16 = int_to_ptr.vmem [resolvable:$true] %s18_s16 }
   0x3   :  { %s339_s18 = smov 8  }
   0x4   :  { %24 = dma.hbm_to_vmem [thread:$0]  %s17_s14, 6144, %s19_s16, [#allocation3], %s338_s17, %s338_s17, %s339_s18  }
   0x5   :  { %333 = dma.done.wait [#allocation3], 6144  }
   0x6   :  { %334 = vsyncadd [#allocation3], 4294961152  ;;  %v47_v0 = vld [vmem:[#allocation2 + $0x78] sm:$0xff]  ;;  %v46_v1 = vld [vmem:[#allocation2 + $0x70] sm:$0xff]  ;;  %s340_s25 = smov [#allocation5]   ;;  %s256_s29 = sshll.u32 %s382_s3, 4  ;;  %s257_s29 = int_to_ptr.hbm [resolvable:$true] %s256_s29 }
   0x7   :  { %52 = vmatpush.msra.mxu0 %v47_v0  ;;  %v45_v2 = vld [vmem:[#allocation2 + $0x68] sm:$0xff]  ;;  %v44_v3 = vld [vmem:[#allocation2 + $0x60] sm:$0xff]  ;;  %v43_v4 = vld [vmem:[#allocation2 + $0x58] sm:$0xff]  ;;  %s254_s26 = sshll.u32 %s340_s25, 4  ;;  %s255_s26 = int_to_ptr.vmem [resolvable:$true] %s254_s26 }
   0x8   :  { %v42_v5 = vld [vmem:[#allocation2 + $0x50] sm:$0xff]  ;;  %v41_v6 = vld [vmem:[#allocation2 + $0x48] sm:$0xff]  ;;  %v40_v7 = vld [vmem:[#allocation2 + $0x40] sm:$0xff] }
   0x9   :  { %53 = vmatpush.msra.mxu0 %v46_v1  ;;  %v39_v8 = vld [vmem:[#allocation2 + $0x38] sm:$0xff]  ;;  %v38_v9 = vld [vmem:[#allocation2 + $0x30] sm:$0xff]  ;;  %v37_v10 = vld [vmem:[#allocation2 + $0x28] sm:$0xff] }
   0xa   :  { %v36_v11 = vld [vmem:[#allocation2 + $0x20] sm:$0xff]  ;;  %v35_v12 = vld [vmem:[#allocation2 + $0x18] sm:$0xff]  ;;  %v34_v13 = vld [vmem:[#allocation2 + $0x10] sm:$0xff] }
   0xb   :  { %54 = vmatpush.msra.mxu0 %v45_v2  ;;  %v33_v14 = vld [vmem:[#allocation2 + $0x8] sm:$0xff]  ;;  %v32_v15 = vld [vmem:[#allocation2] sm:$0xff]  ;;  %v120_v17 = vld [vmem:[#allocation2 + $0xf8] sm:$0xff] }
   0xc   :  { %v31_v16 = vld [vmem:[%s379_s0] sm:$0xff]  ;;  %v119_v18 = vld [vmem:[#allocation2 + $0xf0] sm:$0xff]  ;;  %126 = vmatpush.msra.mxu1 %v120_v17  ;;  %v118_v19 = vld [vmem:[#allocation2 + $0xe8] sm:$0xff] }
   0xd   :  { %55 = vmatpush.msra.mxu0 %v44_v3  ;;  %v117_v20 = vld [vmem:[#allocation2 + $0xe0] sm:$0xff]  ;;  %v116_v21 = vld [vmem:[#allocation2 + $0xd8] sm:$0xff]  ;;  %v115_v22 = vld [vmem:[#allocation2 + $0xd0] sm:$0xff] }
   0xe   :  { %127 = vmatpush.msra.mxu1 %v119_v18  ;;  %v114_v23 = vld [vmem:[#allocation2 + $0xc8] sm:$0xff]  ;;  %v272_v24 = vld [vmem:[%s381_s2] ss:$0 sm:$0xff]  ;;  %v112_v27 = vld [vmem:[#allocation2 + $0xb8] sm:$0xff] }
   0xf   :  { %56 = vmatpush.msra.mxu0 %v43_v4  ;;  %v113_v25 = vld [vmem:[#allocation2 + $0xc0] sm:$0xff]  ;;  %v111_v29 = vld [vmem:[#allocation2 + $0xb0] sm:$0xff]  ;;  %v110_v31 = vld [vmem:[#allocation2 + $0xa8] sm:$0xff] }
  0x10   :  { %128 = vmatpush.msra.mxu1 %v118_v19  ;;  %v109_v32 = vld [vmem:[#allocation2 + $0xa0] sm:$0xff]  ;;  %v108_v33 = vld [vmem:[#allocation2 + $0x98] sm:$0xff]  ;;  %v107_v34 = vld [vmem:[#allocation2 + $0x90] sm:$0xff] }
  0x11   :  { %57 = vmatpush.msra.mxu0 %v42_v5  ;;  %v106_v37 = vld [vmem:[#allocation2 + $0x88] sm:$0xff]  ;;  %v105_v39 = vld [vmem:[#allocation2 + $0x80] sm:$0xff]  ;;  %v189_v17 = vld [vmem:[#allocation2 + $0x150] sm:$0xff] }
  0x12   :  { %129 = vmatpush.msra.mxu1 %v117_v20  ;;  %v273_v1 = vld [vmem:[%s381_s2 + $0x1] ss:$0 sm:$0xff]  ;;  %v188_v19 = vld [vmem:[#allocation2 + $0x148] sm:$0xff] }
  0x13   :  { %58 = vmatpush.msra.mxu0 %v41_v6 }
  0x14   :  { %130 = vmatpush.msra.mxu1 %v116_v21  ;;  %v187_v21 = vld [vmem:[#allocation2 + $0x140] sm:$0xff] }
  0x15   :  { %59 = vmatpush.msra.mxu0 %v40_v7 }
  0x16   :  { %131 = vmatpush.msra.mxu1 %v115_v22 }
  0x17   :  { %60 = vmatpush.msra.mxu0 %v39_v8  ;;  %v194_v8 = vld [vmem:[#allocation2 + $0x178] sm:$0xff] }
  0x18   :  { %132 = vmatpush.msra.mxu1 %v114_v23  ;;  %228 = vmatpush.msra.mxu2 %v194_v8  ;;  %v186_v23 = vld [vmem:[#allocation2 + $0x138] sm:$0xff] }
  0x19   :  { %61 = vmatpush.msra.mxu0 %v38_v9  ;;  %v193_v9 = vld [vmem:[#allocation2 + $0x170] sm:$0xff] }
  0x1a   :  { %133 = vmatpush.msra.mxu1 %v113_v25  ;;  %229 = vmatpush.msra.mxu2 %v193_v9  ;;  %v185_v25 = vld [vmem:[#allocation2 + $0x130] sm:$0xff] }
  0x1b   :  { %62 = vmatpush.msra.mxu0 %v37_v10 }
  0x1c   :  { %134 = vmatpush.msra.mxu1 %v112_v27  ;;  %v184_v27 = vld [vmem:[#allocation2 + $0x128] sm:$0xff] }
  0x1d   :  { %63 = vmatpush.msra.mxu0 %v36_v11  ;;  %v192_v11 = vld [vmem:[#allocation2 + $0x168] sm:$0xff] }
  0x1e   :  { %135 = vmatpush.msra.mxu1 %v111_v29  ;;  %230 = vmatpush.msra.mxu2 %v192_v11  ;;  %v183_v29 = vld [vmem:[#allocation2 + $0x120] sm:$0xff] }
  0x1f   :  { %64 = vmatpush.msra.mxu0 %v35_v12 }
  0x20   :  { %136 = vmatpush.msra.mxu1 %v110_v31  ;;  %v182_v31 = vld [vmem:[#allocation2 + $0x118] sm:$0xff] }
  0x21   :  { %65 = vmatpush.msra.mxu0 %v34_v13  ;;  %v191_v13 = vld [vmem:[#allocation2 + $0x160] sm:$0xff] }
  0x22   :  { %137 = vmatpush.msra.mxu1 %v109_v32  ;;  %231 = vmatpush.msra.mxu2 %v191_v13 }
  0x23   :  { %66 = vmatpush.msra.mxu0 %v33_v14 }
  0x24   :  { %138 = vmatpush.msra.mxu1 %v108_v33  ;;  %v181_v33 = vld [vmem:[#allocation2 + $0x110] sm:$0xff] }
  0x25   :  { %67 = vmatpush.msra.mxu0 %v32_v15  ;;  %v190_v15 = vld [vmem:[#allocation2 + $0x158] sm:$0xff] }
  0x26   :  { %68 = vmatmul.f32.vlgmr.msra.gmra.mxu0 %v31_v16  ;;  %139 = vmatpush.msra.mxu1 %v107_v34 }
  0x27   :  { %232 = vmatpush.msra.mxu2 %v190_v15 }
  0x28   :  { %140 = vmatpush.msra.mxu1 %v106_v37  ;;  %v179_v37 = vld [vmem:[#allocation2 + $0x100] sm:$0xff] }
  0x29   :  { %233 = vmatpush.msra.mxu2 %v189_v17 }
  0x2a   :  { %141 = vmatpush.msra.mxu1 %v105_v39 }
  0x2b   :  { %234 = vmatpush.msra.mxu2 %v188_v19 }
  0x2d   :  { %235 = vmatpush.msra.mxu2 %v187_v21 }
  0x2f   :  { %236 = vmatpush.msra.mxu2 %v186_v23 }
  0x31   :  { %237 = vmatpush.msra.mxu2 %v185_v25 }
  0x33   :  { %238 = vmatpush.msra.mxu2 %v184_v27 }
  0x35   :  { %239 = vmatpush.msra.mxu2 %v183_v29 }
  0x37   :  { %240 = vmatpush.msra.mxu2 %v182_v31 }
  0x39   :  { %241 = vmatpush.msra.mxu2 %v181_v33 }
  0xa3   :  { %v69_v26 = vpop.f32.mrf.mxu0 }
  0xa4   :  { %v70_v28 = vadd.f32 %v272_v24, %v69_v26 }
  0xa6   :  { %v72_v30 = vmul.f32 0.5, %v70_v28 }
  0xa8   :  { %275 = vtanh.f32 %v72_v30 }
  0xae   :  { %v276_v35 = vpop.eup %275 }
  0xaf   :  { %v74_v36 = vadd.f32 1.0, %v276_v35  ;;  %v180_v35 = vld [vmem:[#allocation2 + $0x108] sm:$0xff] }
  0xb0   :  { %242 = vmatpush.msra.mxu2 %v180_v35 }
  0xb1   :  { %v75_v38 = vmul.f32 0.5, %v74_v36 }
  0xb2   :  { %243 = vmatpush.msra.mxu2 %v179_v37 }
  0xb3   :  { %v76_v40 = vrot.slane %v75_v38, 4 }
  0xb5   :  { %v77_v41 = vadd.f32 %v76_v40, %v75_v38 }
  0xb7   :  { %v78_v42 = vrot.slane %v77_v41, 2 }
  0xb9   :  { %v79_v43 = vadd.f32 %v78_v42, %v77_v41 }
  0xbb   :  { %v80_v44 = vrot.slane %v79_v43, 1 }
  0xbd   :  { %v81_v45 = vadd.f32 %v80_v44, %v79_v43 }
  0xbf   :  { %v82_v46 = vmul.f32 0.125, %v81_v45 }
  0xc1   :  { %v83_v47 = vsub.f32 %v75_v38, %v82_v46 }
  0xc3   :  { %v84_v48 = vmul.f32 %v83_v47, %v83_v47 }
  0xc5   :  { %v85_v49 = vrot.slane %v84_v48, 4 }
  0xc7   :  { %v86_v50 = vadd.f32 %v85_v49, %v84_v48 }
  0xc9   :  { %v87_v51 = vrot.slane %v86_v50, 2 }
  0xcb   :  { %v88_v52 = vadd.f32 %v87_v51, %v86_v50 }
  0xcd   :  { %v89_v53 = vrot.slane %v88_v52, 1 }
  0xcf   :  { %v90_v54 = vadd.f32 %v89_v53, %v88_v52 }
  0xd1   :  { %v91_v55 = vmul.f32 0.125, %v90_v54 }
  0xd3   :  { %v92_v56 = vadd.f32 1e-05, %v91_v55 }
  0xd5   :  { %277 = vrsqrt.f32 %v92_v56  ;;  %vm99_vm1 = vweird.f32 %v92_v56 }
  0xdb   :  { %v278_v57 = vpop.eup %277 }
  0xdc   :  { %v94_v58 = vmul.f32 %v278_v57, %v92_v56  ;;  %vm100_vm0 = vweird.f32 %v278_v57 }
  0xdd   :  { %vm101_vm2 = vmor %vm99_vm1, %vm100_vm0 }
  0xde   :  { %v95_v59 = vmul.f32 %v278_v57, %v94_v58 }
  0xe0   :  { %v96_v60 = vmul.f32 0.5, %v95_v59 }
  0xe2   :  { %v97_v61 = vsub.f32 1.5, %v96_v60 }
  0xe4   :  { %v98_v62 = vmul.f32 %v278_v57, %v97_v61 }
  0xe6   :  { %v102_v63 = vsel %vm101_vm2, %v278_v57, %v98_v62 }
  0xe7   :  { %v103_v0 = vmul.f32 %v102_v63, %v83_v47 }
  0xe9   :  { %142 = vmatmul.f32.vlgmr.msra.gmra.mxu1 %v103_v0 }
 0x166   :  { %v143_v2 = vpop.f32.mrf.mxu1 }
 0x167   :  { %v144_v3 = vadd.f32 %v273_v1, %v143_v2 }
 0x169   :  { %v146_v4 = vmul.f32 0.5, %v144_v3 }
 0x16b   :  { %279 = vtanh.f32 %v146_v4 }
 0x171   :  { %v280_v5 = vpop.eup %279 }
 0x172   :  { %v148_v6 = vadd.f32 1.0, %v280_v5 }
 0x174   :  { %v149_v7 = vmul.f32 0.5, %v148_v6 }
 0x176   :  { %v150_v10 = vrot.slane %v149_v7, 4 }
 0x178   :  { %v151_v12 = vadd.f32 %v150_v10, %v149_v7  ;;  %v274_v10 = vld [vmem:[%s381_s2 + $0x2] ss:$0 sm:$0xff] }
 0x17a   :  { %v152_v14 = vrot.slane %v151_v12, 2 }
 0x17c   :  { %v153_v16 = vadd.f32 %v152_v14, %v151_v12 }
 0x17e   :  { %v154_v18 = vrot.slane %v153_v16, 1 }
 0x180   :  { %v155_v20 = vadd.f32 %v154_v18, %v153_v16 }
 0x182   :  { %v156_v22 = vmul.f32 0.125, %v155_v20 }
 0x184   :  { %v157_v24 = vsub.f32 %v149_v7, %v156_v22 }
 0x186   :  { %v158_v26 = vmul.f32 %v157_v24, %v157_v24 }
 0x188   :  { %v159_v28 = vrot.slane %v158_v26, 4 }
 0x18a   :  { %v160_v30 = vadd.f32 %v159_v28, %v158_v26 }
 0x18c   :  { %v161_v32 = vrot.slane %v160_v30, 2 }
 0x18e   :  { %v162_v34 = vadd.f32 %v161_v32, %v160_v30 }
 0x190   :  { %v163_v36 = vrot.slane %v162_v34, 1 }
 0x192   :  { %v164_v38 = vadd.f32 %v163_v36, %v162_v34 }
 0x194   :  { %v165_v39 = vmul.f32 0.125, %v164_v38 }
 0x196   :  { %v166_v40 = vadd.f32 1e-05, %v165_v39 }
 0x198   :  { %281 = vrsqrt.f32 %v166_v40  ;;  %vm173_vm4 = vweird.f32 %v166_v40 }
 0x19e   :  { %v282_v41 = vpop.eup %281 }
 0x19f   :  { %v168_v42 = vmul.f32 %v282_v41, %v166_v40  ;;  %vm174_vm3 = vweird.f32 %v282_v41 }
 0x1a0   :  { %vm175_vm5 = vmor %vm173_vm4, %vm174_vm3 }
 0x1a1   :  { %v169_v43 = vmul.f32 %v282_v41, %v168_v42 }
 0x1a3   :  { %v170_v44 = vmul.f32 0.5, %v169_v43 }
 0x1a5   :  { %v171_v45 = vsub.f32 1.5, %v170_v44 }
 0x1a7   :  { %v172_v46 = vmul.f32 %v282_v41, %v171_v45 }
 0x1a9   :  { %v176_v47 = vsel %vm175_vm5, %v282_v41, %v172_v46 }
 0x1aa   :  { %v177_v48 = vmul.f32 %v176_v47, %v157_v24 }
 0x1ac   :  { %v197_v49 = vrot.slane %v177_v48, 4 }
 0x1ae   :  { %v198_v50 = vadd.f32 %v197_v49, %v177_v48 }
 0x1b0   :  { %v199_v51 = vrot.slane %v198_v50, 2 }
 0x1b2   :  { %v200_v52 = vadd.f32 %v199_v51, %v198_v50 }
 0x1b4   :  { %v201_v53 = vrot.slane %v200_v52, 1 }
 0x1b6   :  { %v202_v54 = vadd.f32 %v201_v53, %v200_v52 }
 0x1b8   :  { %v203_v55 = vmul.f32 0.125, %v202_v54 }
 0x1ba   :  { %v204_v56 = vsub.f32 %v177_v48, %v203_v55 }
 0x1bc   :  { %v205_v57 = vmul.f32 %v204_v56, %v204_v56 }
 0x1be   :  { %v206_v58 = vrot.slane %v205_v57, 4 }
 0x1c0   :  { %v207_v59 = vadd.f32 %v206_v58, %v205_v57 }
 0x1c2   :  { %v208_v60 = vrot.slane %v207_v59, 2 }
 0x1c4   :  { %v209_v61 = vadd.f32 %v208_v60, %v207_v59 }
 0x1c6   :  { %v210_v62 = vrot.slane %v209_v61, 1 }
 0x1c8   :  { %v211_v63 = vadd.f32 %v210_v62, %v209_v61 }
 0x1ca   :  { %v212_v0 = vmul.f32 0.125, %v211_v63 }
 0x1cc   :  { %v213_v1 = vadd.f32 1e-05, %v212_v0 }
 0x1ce   :  { %283 = vrsqrt.f32 %v213_v1  ;;  %vm220_vm7 = vweird.f32 %v213_v1 }
 0x1d4   :  { %v284_v2 = vpop.eup %283 }
 0x1d5   :  { %v215_v3 = vmul.f32 %v284_v2, %v213_v1  ;;  %vm221_vm6 = vweird.f32 %v284_v2 }
 0x1d6   :  { %vm222_vm8 = vmor %vm220_vm7, %vm221_vm6 }
 0x1d7   :  { %v216_v4 = vmul.f32 %v284_v2, %v215_v3 }
 0x1d9   :  { %v217_v5 = vmul.f32 0.5, %v216_v4 }
 0x1db   :  { %v218_v6 = vsub.f32 1.5, %v217_v5 }
 0x1dd   :  { %v219_v7 = vmul.f32 %v284_v2, %v218_v6 }
 0x1df   :  { %v223_v8 = vsel %vm222_vm8, %v284_v2, %v219_v7 }
 0x1e0   :  { %v224_v9 = vmul.f32 %v223_v8, %v204_v56 }
 0x1e2   :  { %244 = vmatmul.f32.vlgmr.msra.gmra.mxu2 %v224_v9 }
 0x265   :  { %v245_v11 = vpop.f32.mrf.mxu2 }
 0x266   :  { %v246_v12 = vadd.f32 %v274_v10, %v245_v11 }
 0x268   :  { %248 = vst [vmem:[#allocation5] sm:$0xff] %v246_v12 }
 0x269   :  { %259 = dma.vmem_to_hbm [thread:$0]  %s255_s26, 128, %s257_s29, [#allocation4]  }
 0x26a   :  { %335 = dma.done.wait [#allocation4], 128  }
 0x26b   :  { %336 = vsyncadd [#allocation4], 4294967168 }
 0x26c   :  { %264 = vsyncpa [#allocation3], 1 }
 0x26d   :  { %265 = vsyncpa [#allocation4], 1 }

</bundles_post_ra>
